<compile_context>
chip_gen: v7x
topology: tpu7x:2x2x1
jax: 0.10.0
libtpu: 0.0.40
codegen_flags: <defaults>
</compile_context>

<pallas_src>
import functools

import jax
import jax.numpy as jnp
from jax.experimental import pallas as pl
from jax.experimental.pallas import tpu as pltpu

EPS = 1e-5


def _round_up(x, m):
    return ((x + m - 1) // m) * m


def _pick_tile(M, block_rows, min_steps=4):
    """Largest row tile <= block_rows, multiple of 8 (or the full M), capped so the
    grid has >= min_steps blocks when M is large enough (v7x megacore sharding)."""
    tm = min(block_rows, M)
    if pl.cdiv(M, tm) < min_steps:
        tm = pl.cdiv(M, min_steps)
    tm = max(8, _round_up(tm, 8))
    if tm >= M:
        return M  # one full block; any row count is legal when it equals the dim
    return tm


# ----------------------------------------------------------------------------
# Kernel: Linear -> LayerNorm(affine) -> ReLU on one (tm, D) slab.
#   x_ref : (tm, C)     coordinates
#   wp_ref: (C+3, D)    rows [0:C] = weight.T, C = bias, C+1 = gamma, C+2 = beta
#   o_ref : (tm, D)
# ----------------------------------------------------------------------------
def _encode_kernel(x_ref, wp_ref, o_ref, *, coord_dim):
    x = x_ref[...].astype(jnp.float32)    # (tm, C)
    wp = wp_ref[...]                      # (C+3, D) f32

    # Linear: unrolled broadcast-MACs over the tiny coord dim (VPU).
    y = x[:, 0:1] * wp[0:1, :]
    for c in range(1, coord_dim):
        y = y + x[:, c:c + 1] * wp[c:c + 1, :]
    y = y + wp[coord_dim:coord_dim + 1, :]                    # + bias

    # LayerNorm over the embedding (lane) axis: biased variance, eps=1e-5.
    mu = jnp.mean(y, axis=-1, keepdims=True)
    d = y - mu
    var = jnp.mean(d * d, axis=-1, keepdims=True)
    y = d * jax.lax.rsqrt(var + EPS)                          # EUP rsqrt
    y = y * wp[coord_dim + 1:coord_dim + 2, :] + wp[coord_dim + 2:coord_dim + 3, :]

    o_ref[...] = jnp.maximum(y, 0.0).astype(o_ref.dtype)      # ReLU + (optional) narrow


# ----------------------------------------------------------------------------
# Parameter packing (hoist out of the hot path / let jit cache it).
# ----------------------------------------------------------------------------
def pack_params(weight, bias, gamma, beta):
    """weight: (D, C) PyTorch Linear layout; bias/gamma/beta: (D,).
    Returns a single (C+3, D) f32 slab: [weight.T; bias; gamma; beta]."""
    w_k = weight.T.astype(jnp.float32)                                   # (C, D)
    rows = jnp.stack([bias, gamma, beta], axis=0).astype(jnp.float32)    # (3, D)
    return jnp.concatenate([w_k, rows], axis=0)                          # (C+3, D)


# ----------------------------------------------------------------------------
# Wrapper: (B, N, C) -> (B, N, D).
# ----------------------------------------------------------------------------
def abs_coord_encoder(x, packed_params, *, block_rows=1024, out_dtype=None):
    """x: (B, N, C). packed_params: (C+3, D) from pack_params().
    out_dtype: output dtype (default x.dtype); pass jnp.bfloat16 to halve output HBM
    traffic while keeping f32 math inside the kernel."""
    B, N, C = x.shape
    D = packed_params.shape[1]
    assert packed_params.shape[0] == C + 3
    M = B * N
    out_dtype = x.dtype if out_dtype is None else out_dtype

    x2 = x.reshape(M, C)                     # fold batch into rows; no padding
    tm = _pick_tile(M, block_rows)
    grid = (pl.cdiv(M, tm),)                 # Pallas masks the ragged tail block

    cost = pl.CostEstimate(
        flops=2 * M * C * D + 8 * M * D,
        transcendentals=M,
        bytes_accessed=M * C * x2.dtype.itemsize
        + (C + 3) * D * 4
        + M * D * jnp.dtype(out_dtype).itemsize,
    )

    out = pl.pallas_call(
        functools.partial(_encode_kernel, coord_dim=C),
        out_shape=jax.ShapeDtypeStruct((M, D), out_dtype),
        grid=grid,
        in_specs=[
            pl.BlockSpec((tm, C), lambda i: (i, 0)),          # row tile of coords
            pl.BlockSpec((C + 3, D), lambda i: (0, 0)),       # resident param slab
        ],
        out_specs=pl.BlockSpec((tm, D), lambda i: (i, 0)),
        compiler_params=pltpu.CompilerParams(dimension_semantics=("parallel",)),
        cost_estimate=cost,
    )(x2, packed_params)

    return out.reshape(B, N, D)


# ----------------------------------------------------------------------------
# Pure-JAX reference of the PyTorch semantics (correctness check only).
# ----------------------------------------------------------------------------
def _ref_abs_coord_encoder(x, weight, bias, gamma, beta):
    y = jnp.einsum("bnc,dc->bnd", x, weight) + bias
    mu = jnp.mean(y, axis=-1, keepdims=True)
    var = jnp.mean((y - mu) ** 2, axis=-1, keepdims=True)
    y = (y - mu) / jnp.sqrt(var + EPS)
    y = y * gamma + beta
    return jnp.maximum(y, 0.0)


def _make_params(key, coord_dim, embed_dim):
    kw, kb, kg, kbt = jax.random.split(key, 4)
    bound = 1.0 / (coord_dim ** 0.5)  # PyTorch Linear default init bounds
    weight = jax.random.uniform(kw, (embed_dim, coord_dim), jnp.float32, -bound, bound)
    bias = jax.random.uniform(kb, (embed_dim,), jnp.float32, -bound, bound)
    gamma = 1.0 + 0.1 * jax.random.normal(kg, (embed_dim,), jnp.float32)
    beta = 0.1 * jax.random.normal(kbt, (embed_dim,), jnp.float32)
    return weight, bias, gamma, beta


# ----------------------------------------------------------------------------
if __name__ == "__main__":
    key = jax.random.PRNGKey(0)
    k_main, k_small, k_ragged = jax.random.split(key, 3)

    # Config 1: 3-D coords, lane-dense embed_dim=128, M = 128 rows (grid of 4 tiles).
    B, N, C, D = 2, 64, 3, 128
    kx, kp = jax.random.split(k_main, 2)
    x = jax.random.normal(kx, (B, N, C), jnp.float32)
    weight, bias, gamma, beta = _make_params(kp, C, D)
    wp = pack_params(weight, bias, gamma, beta)

    out = jax.block_until_ready(abs_coord_encoder(x, wp))
    ref = _ref_abs_coord_encoder(x, weight, bias, gamma, beta)
    assert out.shape == (B, N, D)
    assert jnp.allclose(out, ref, rtol=1e-4, atol=1e-5), "mismatch vs reference (main)"

    # Config 2: 2-D coords, small/unaligned embed_dim (masked-store path).
    B2, N2, C2, D2 = 2, 16, 2, 32
    kx2, kp2 = jax.random.split(k_small, 2)
    x2 = jax.random.normal(kx2, (B2, N2, C2), jnp.float32)
    w2, b2, g2, bt2 = _make_params(kp2, C2, D2)
    wp2 = pack_params(w2, b2, g2, bt2)

    out2 = jax.block_until_ready(abs_coord_encoder(x2, wp2))
    ref2 = _ref_abs_coord_encoder(x2, w2, b2, g2, bt2)
    assert out2.shape == (B2, N2, D2)
    assert jnp.allclose(out2, ref2, rtol=1e-4, atol=1e-5), "mismatch vs reference (small)"

    # Config 3: ragged row count (M = 100 not a multiple of the 32-row tile).
    B3, N3, C3, D3 = 2, 50, 3, 128
    kx3, kp3 = jax.random.split(k_ragged, 2)
    x3 = jax.random.normal(kx3, (B3, N3, C3), jnp.float32)
    w3, b3, g3, bt3 = _make_params(kp3, C3, D3)
    wp3 = pack_params(w3, b3, g3, bt3)

    out3 = jax.block_until_ready(abs_coord_encoder(x3, wp3))
    ref3 = _ref_abs_coord_encoder(x3, w3, b3, g3, bt3)
    assert out3.shape == (B3, N3, D3)
    assert jnp.allclose(out3, ref3, rtol=1e-4, atol=1e-5), "mismatch vs reference (ragged)"

    print("KERNEL_OK")
</pallas_src>

<mosaic_0001>
module attributes {stable_mosaic.version = 11 : i64} {
  func.func @_encode_kernel(%arg0: i32, %arg1: memref<32x3xf32, #tpu.memory_space<vmem>>, %arg2: memref<6x128xf32, #tpu.memory_space<vmem>>, %arg3: memref<32x128xf32, #tpu.memory_space<vmem>>) attributes {dimension_semantics = [#tpu.dimension_semantics<parallel>], iteration_bounds = array<i64: 4>, scalar_prefetch = 0 : i64, scratch_operands = 0 : i64, tpu.core_type = #tpu.core_type<tc>, window_params = [{transform_indices = @transform_0, window_bounds = array<i64: 32, 3>}, {pipeline_mode = #tpu.pipeline_mode<synchronous>, transform_indices = @transform_1, window_bounds = array<i64: 6, 128>}, {transform_indices = @transform_2, window_bounds = array<i64: 32, 128>}]} {
    %c0 = arith.constant 0 : index
    %c0_0 = arith.constant 0 : index
    %0 = vector.load %arg1[%c0, %c0_0] : memref<32x3xf32, #tpu.memory_space<vmem>>, vector<32x3xf32>
    %c0_1 = arith.constant 0 : index
    %c0_2 = arith.constant 0 : index
    %1 = vector.load %arg2[%c0_1, %c0_2] : memref<6x128xf32, #tpu.memory_space<vmem>>, vector<6x128xf32>
    %2 = vector.extract_strided_slice %0 {offsets = [0, 0], sizes = [32, 1], strides = [1, 1]} : vector<32x3xf32> to vector<32x1xf32>
    %3 = vector.extract_strided_slice %1 {offsets = [0, 0], sizes = [1, 128], strides = [1, 1]} : vector<6x128xf32> to vector<1x128xf32>
    %4 = vector.broadcast %2 : vector<32x1xf32> to vector<32x128xf32>
    %5 = vector.broadcast %3 : vector<1x128xf32> to vector<32x128xf32>
    %6 = arith.mulf %4, %5 : vector<32x128xf32>
    %7 = vector.extract_strided_slice %0 {offsets = [0, 1], sizes = [32, 1], strides = [1, 1]} : vector<32x3xf32> to vector<32x1xf32>
    %8 = vector.extract_strided_slice %1 {offsets = [1, 0], sizes = [1, 128], strides = [1, 1]} : vector<6x128xf32> to vector<1x128xf32>
    %9 = vector.broadcast %7 : vector<32x1xf32> to vector<32x128xf32>
    %10 = vector.broadcast %8 : vector<1x128xf32> to vector<32x128xf32>
    %11 = arith.mulf %9, %10 : vector<32x128xf32>
    %12 = arith.addf %6, %11 : vector<32x128xf32>
    %13 = vector.extract_strided_slice %0 {offsets = [0, 2], sizes = [32, 1], strides = [1, 1]} : vector<32x3xf32> to vector<32x1xf32>
    %14 = vector.extract_strided_slice %1 {offsets = [2, 0], sizes = [1, 128], strides = [1, 1]} : vector<6x128xf32> to vector<1x128xf32>
    %15 = vector.broadcast %13 : vector<32x1xf32> to vector<32x128xf32>
    %16 = vector.broadcast %14 : vector<1x128xf32> to vector<32x128xf32>
    %17 = arith.mulf %15, %16 : vector<32x128xf32>
    %18 = arith.addf %12, %17 : vector<32x128xf32>
    %19 = vector.extract_strided_slice %1 {offsets = [3, 0], sizes = [1, 128], strides = [1, 1]} : vector<6x128xf32> to vector<1x128xf32>
    %20 = vector.broadcast %19 : vector<1x128xf32> to vector<32x128xf32>
    %21 = arith.addf %18, %20 : vector<32x128xf32>
    %cst = arith.constant dense<0.000000e+00> : vector<32xf32>
    %22 = vector.multi_reduction <add>, %21, %cst [1] : vector<32x128xf32> to vector<32xf32>
    %23 = vector.shape_cast %22 : vector<32xf32> to vector<32x1xf32>
    %cst_3 = arith.constant 1.280000e+02 : f32
    %24 = vector.broadcast %cst_3 : f32 to vector<32x1xf32>
    %25 = arith.divf %23, %24 : vector<32x1xf32>
    %26 = vector.broadcast %25 : vector<32x1xf32> to vector<32x128xf32>
    %27 = arith.subf %21, %26 : vector<32x128xf32>
    %28 = arith.mulf %27, %27 : vector<32x128xf32>
    %cst_4 = arith.constant dense<0.000000e+00> : vector<32xf32>
    %29 = vector.multi_reduction <add>, %28, %cst_4 [1] : vector<32x128xf32> to vector<32xf32>
    %30 = vector.shape_cast %29 : vector<32xf32> to vector<32x1xf32>
    %cst_5 = arith.constant 1.280000e+02 : f32
    %31 = vector.broadcast %cst_5 : f32 to vector<32x1xf32>
    %32 = arith.divf %30, %31 : vector<32x1xf32>
    %cst_6 = arith.constant 9.99999974E-6 : f32
    %33 = vector.broadcast %cst_6 : f32 to vector<32x1xf32>
    %34 = arith.addf %32, %33 : vector<32x1xf32>
    %35 = math.rsqrt %34 : vector<32x1xf32>
    %36 = vector.broadcast %35 : vector<32x1xf32> to vector<32x128xf32>
    %37 = arith.mulf %27, %36 : vector<32x128xf32>
    %38 = vector.extract_strided_slice %1 {offsets = [4, 0], sizes = [1, 128], strides = [1, 1]} : vector<6x128xf32> to vector<1x128xf32>
    %39 = vector.broadcast %38 : vector<1x128xf32> to vector<32x128xf32>
    %40 = arith.mulf %37, %39 : vector<32x128xf32>
    %41 = vector.extract_strided_slice %1 {offsets = [5, 0], sizes = [1, 128], strides = [1, 1]} : vector<6x128xf32> to vector<1x128xf32>
    %42 = vector.broadcast %41 : vector<1x128xf32> to vector<32x128xf32>
    %43 = arith.addf %40, %42 : vector<32x128xf32>
    %cst_7 = arith.constant 0.000000e+00 : f32
    %44 = vector.broadcast %cst_7 : f32 to vector<32x128xf32>
    %45 = arith.maximumf %43, %44 : vector<32x128xf32>
    %c0_8 = arith.constant 0 : index
    %c0_9 = arith.constant 0 : index
    %46 = vector.load %arg3[%c0_8, %c0_9] : memref<32x128xf32, #tpu.memory_space<vmem>>, vector<32x128xf32>
    tpu.vector_store %arg3[%c0_8, %c0_9], %45 {strides = array<i32>} : memref<32x128xf32, #tpu.memory_space<vmem>>, vector<32x128xf32>,
    return
  }
  func.func @transform_0(%arg0: i32) -> (i32, i32) {
    %c0_i32 = arith.constant 0 : i32
    %c0_i32_0 = arith.constant 0 : i32
    return %arg0, %c0_i32 : i32, i32
  }
  func.func @transform_1(%arg0: i32) -> (i32, i32) {
    %c0_i32 = arith.constant 0 : i32
    %c0_i32_0 = arith.constant 0 : i32
    %c0_i32_1 = arith.constant 0 : i32
    return %c0_i32, %c0_i32_0 : i32, i32
  }
  func.func @transform_2(%arg0: i32) -> (i32, i32) {
    %c0_i32 = arith.constant 0 : i32
    %c0_i32_0 = arith.constant 0 : i32
    return %arg0, %c0_i32 : i32, i32
  }
}

</mosaic_0001>

<bundles_post_ra>
// kernel: tpu_custom_call.1
= control target key start
LH: loop header
LB: loop body
LE: loop exit
PB: predicated region body
PF: predicated region fallthrough
CT: control target
= control target key end

     0   :  { %7 = vsyncpa [#allocation3], 0  ;;  %s668_s0 = inlined_call_operand.vmem [shape: f32[128,3], index: 0, kind: input, shape index: {}]   ;;  %s669_s1 = inlined_call_operand.vmem [shape: f32[6,128], index: 1, kind: input, shape index: {}]   ;;  %s670_s2 = inlined_call_operand.hbm [shape: f32[128,128], index: 2, kind: output, shape index: {}]  }
   0x1   :  { %9 = vsyncpa [#allocation3 + $0x1], 0  ;;  %s543_s9 = smov 0   ;;  %s545_s10 = smov 0  }
   0x2   :  { %s547_s11 = smov 0   ;;  %s549_s12 = smov 0  }
   0x3 LB: > { %s564_s13 = sadd.s32 4294967295, %s520_s12   ;;  %s387_s14 = sadd.s32 4294967294, %s520_s12   ;;  %s520_s12 = sphi %s549_s12, %s676_s12   ;;  %s516_s11 = sphi %s547_s11, %s675_s11   ;;  %s512_s10 = sphi %s545_s10, %s674_s10   ;;  %s508_s9 = sphi %s543_s9, %s673_s9  }
   0x4   : > { %s568_s15 = sadd.s32 1, %s520_s12   ;;  %s69_s16 = sadd.s32 1, %s516_s11 }
   0x5   : > { %s66_s17 = ssub.s32 %s520_s12, %s568_s15  ;;  %p79_p0 = scmp.ne.s32.totalorder %s516_s11, %s512_s10 }
   0x6   : > { %p67_p1 = scmp.eq.s32.totalorder %s66_s17, 0  ;;  %p80_p2 = scmp.eq.s32.totalorder %s564_s13, 3 }
   0x7   : > { %p85_p3 = scmp.ne.s32.totalorder %s512_s10, %s508_s9  ;;  %p86_p4 = scmp.eq.s32.totalorder %s387_s14, 3 }
   0x8   : > { %s579_s18 = scalar_select %p67_p1, %s516_s11, %s69_s16  }
   0x9   : > { %p581_p5 = por %p80_p2, %p79_p0  ;;  %p585_p6 = por %p86_p4, %p85_p3 }
   0xa   : > { %p390_p7 = scmp.ge.s32.totalorder %s520_s12, 1  ;;  %p116_p8 = scmp.lt.s32.totalorder %s520_s12, 5 }
   0xc   : > { %p117_p9 = pnand %p390_p7, %p116_p8 }
   0xd   : > { %s392_s21 = sshll.u32 (!%p117_p9), %s564_s13, 2  ;;  %v522_v0 = vmov (!%p117_p9), 0   ;;  %v523_v5 = vmov (!%p117_p9), 1   ;;  %v524_v6 = vmov (!%p117_p9), 2   ;;  %v170_v7 = vlaneseq (!%p117_p9)  ;;  %v601_v14 = vld [vmem:[%s669_s1] sm:$0x3f] (!%p117_p9) }
   0xe   : > { %120 = sbr.rel (%p117_p9) target bundleno = 513 (0x201), region = 28  ;;  %445 = vset.pattern.permute.xlu1 (!%p117_p9), %v522_v0  ;;  %444 = vset.pattern.permute.xlu0 (!%p117_p9), %v522_v0  ;;  %p139_p10 = scmp.lt.s32.totalorder (!%p117_p9), %s392_s21, 15 }
   0xf   : > { %v595_v10 = vshrl.u32 (!%p117_p9), %v170_v7, 7  ;;  %s135_s28 = sand.u32 (!%p117_p9), 1, %s512_s10   ;;  %s399_s3 = sshll.u32 (!%p117_p9), %s564_s13, 9 }
  0x10   : > { %s391_s29 = sshll.u32 (!%p117_p9), %s135_s28, 5  ;;  %s621_s7 = scalar_lea.hbm (!%p117_p9), %s670_s2, %s399_s3 }
  0x11   : > { %v196_v13 = vsub.s32 (!%p117_p9), 1, %v595_v10  ;;  %v172_v17 = vsub.s32 (!%p117_p9), 0, %v595_v10  ;;  %v224_v19 = vsub.s32 (!%p117_p9), 2, %v595_v10  ;;  %v236_v24 = vsub.s32 (!%p117_p9), 3, %v595_v10  ;;  %s137_s30 = scalar_lea.vmem (!%p117_p9), [#allocation2], %s391_s29  ;;  %s627_s8 = scalar_lea.sflag (!%p117_p9), [#allocation3], %s135_s28 }
  0x12   : > { %s325_s4 = sshll.u32 (!%p117_p9), %s137_s30, 4  ;;  %s525_s13 = smov (!%p117_p9), [#allocation2]   ;;  %s623_s4 = int_to_ptr.vmem [resolvable:$true] %s325_s4 }
  0x13   : > { %v197_v18 = vrot.slane (!%p117_p9), %v601_v14, %v196_v13  ;;  %v173_v22 = vrot.slane (!%p117_p9), %v601_v14, %v172_v17  ;;  %v225_v26 = vrot.slane (!%p117_p9), %v601_v14, %v224_v19  ;;  %v237_v32 = vrot.slane (!%p117_p9), %v601_v14, %v236_v24  ;;  %s458_s14 = scalar_lea.vmem (!%p117_p9), %s623_s4, 512  ;;  %s462_s16 = sshll.u32 (!%p117_p9), %s525_s13, 4  ;;  %s463_s16 = int_to_ptr.vmem [resolvable:$false] %s462_s16 }
  0x14   : > { %v289_v19 = vsub.s32 (!%p117_p9), 4, %v595_v10  ;;  %p459_p11 = scmp.ne.s32.totalorder (!%p117_p9), %s623_s4, %s458_s14  ;;  %s464_s17 = scalar_lea.vmem (!%p117_p9), %s463_s16, 1024 }
  0x15   : > { %s678_s21 = smov (!%p139_p10, %s392_s21), 15  ;;  %p465_p0 = scmp.lt.s32.totalorder %s623_s4, %s463_s16 }
  0x16   : > { %s393_s22 = sshll.u32 %s678_s21, 3  ;;  %p460_p12 = pnand %p459_p11, %p581_p5 }
  0x17   : > { %s142_s25 = scalar_lea.vmem %s668_s0, %s393_s22  ;;  %p466_p1 = scmp.lt.s32.totalorder %s464_s17, %s458_s14 }
  0x18   : > { %v147_v1 = vld [vmem:[%s142_s25 + $0x10] sm:$0xff]  ;;  %v145_v2 = vld [vmem:[%s142_s25] sm:$0xff]  ;;  %v148_v3 = vld [vmem:[%s142_s25 + $0x18] sm:$0xff]  ;;  %p461_p13 = pneg %p460_p12 }
  0x19   : > { %162 = vperm.xlu1 %445, %v147_v1   ;;  %152 = vperm.xlu0 %444, %v145_v2   ;;  %v146_v4 = vld [vmem:[%s142_s25 + $0x8] sm:$0xff]  ;;  %p467_p2 = por %p466_p1, %p465_p0 }
  0x1b   : > { %p468_p3 = pnand %p467_p2, %p461_p13 }
  0x1d   : > { %167 = vperm.xlu1 %445, %v148_v3   ;;  %157 = vperm.xlu0 %444, %v146_v4  }
  0x21   : > { %447 = vset.pattern.permute.xlu1 %v523_v5  ;;  %446 = vset.pattern.permute.xlu0 %v523_v5 }
  0x22   : > { %183 = vperm.xlu1 %447, %v146_v4   ;;  %179 = vperm.xlu0 %446, %v145_v2  }
  0x26   : > { %187 = vperm.xlu1 %447, %v147_v1   ;;  %191 = vperm.xlu0 %446, %v148_v3  }
  0x2a   : > { %448 = vset.pattern.permute.xlu1 %v524_v6  ;;  %449 = vset.pattern.permute.xlu0 %v524_v6 }
  0x2b   : > { %207 = vperm.xlu1 %448, %v145_v2   ;;  %211 = vperm.xlu0 %449, %v146_v4  }
  0x2f   : > { %215 = vperm.xlu1 %448, %v147_v1  }
  0x33   : > { %219 = vperm.xlu1 %448, %v148_v3  }
  0x98   : > { %v163_v8 = vpop.permute.xlu1 %162  ;;  %v153_v9 = vpop.permute.xlu0 %152 }
  0x99   : > { %v174_v28 = vmul.f32 %v173_v22, %v153_v9  ;;  %v176_v37 = vmul.f32 %v173_v22, %v163_v8 }
  0x9c   : > { %v168_v11 = vpop.permute.xlu1 %167  ;;  %v158_v12 = vpop.permute.xlu0 %157 }
  0x9d   : > { %v175_v27 = vmul.f32 %v173_v22, %v158_v12  ;;  %v177_v46 = vmul.f32 %v173_v22, %v168_v11  ;;  %v290_v22 = vrot.slane %v601_v14, %v289_v19 }
  0xa1   : > { %v184_v15 = vpop.permute.xlu1 %183  ;;  %v180_v16 = vpop.permute.xlu0 %179 }
  0xa2   : > { %v199_v23 = vmul.f32 %v197_v18, %v184_v15  ;;  %v198_v25 = vmul.f32 %v197_v18, %v180_v16 }
  0xa4   : > { %v203_v29 = vadd.f32 %v199_v23, %v175_v27  ;;  %v202_v33 = vadd.f32 %v198_v25, %v174_v28 }
  0xa5   : > { %v188_v20 = vpop.permute.xlu1 %187  ;;  %v192_v21 = vpop.permute.xlu0 %191 }
  0xa6   : > { %v200_v34 = vmul.f32 %v197_v18, %v188_v20  ;;  %v201_v40 = vmul.f32 %v197_v18, %v192_v21  ;;  %v297_v21 = vsub.s32 5, %v595_v10 }
  0xa8   : > { %v204_v42 = vadd.f32 %v200_v34, %v176_v37  ;;  %v205_v49 = vadd.f32 %v201_v40, %v177_v46  ;;  %v298_v25 = vrot.slane %v601_v14, %v297_v21 }
  0xaa   : > { %v208_v30 = vpop.permute.xlu1 %207  ;;  %v212_v31 = vpop.permute.xlu0 %211 }
  0xab   : > { %v226_v35 = vmul.f32 %v225_v26, %v208_v30  ;;  %v227_v36 = vmul.f32 %v225_v26, %v212_v31 }
  0xad   : > { %v230_v38 = vadd.f32 %v226_v35, %v202_v33  ;;  %v231_v39 = vadd.f32 %v227_v36, %v203_v29 }
  0xae   : > { %v216_v41 = vpop.permute.xlu1 %215 }
  0xaf   : > { %v228_v43 = vmul.f32 %v225_v26, %v216_v41  ;;  %v238_v44 = vadd.f32 %v237_v32, %v230_v38  ;;  %v239_v45 = vadd.f32 %v237_v32, %v231_v39 }
  0xb1   : > { %v232_v47 = vadd.f32 %v228_v43, %v204_v42  ;;  %242 = vadd.xlane.f32.xlu0 %v238_v44  ;;  %244 = vadd.xlane.f32.xlu1 %v239_v45 }
  0xb2   : > { %v220_v48 = vpop.permute.xlu1 %219 }
  0xb3   : > { %v229_v50 = vmul.f32 %v225_v26, %v220_v48  ;;  %v240_v51 = vadd.f32 %v237_v32, %v232_v47 }
  0xb5   : > { %v233_v52 = vadd.f32 %v229_v50, %v205_v49  ;;  %246 = vadd.xlane.f32.xlu0 %v240_v51 }
  0xb7   : > { %v241_v53 = vadd.f32 %v237_v32, %v233_v52 }
  0xb9   : > { %248 = vadd.xlane.f32.xlu0 %v241_v53 }
 0x13e   : > { %v245_v54 = vpop.xlane.xlu1 %244  ;;  %v243_v55 = vpop.xlane.xlu0 %242 }
 0x13f   : > { %v252_v56 = vmul.f32 0.0078125, %v245_v54  ;;  %v251_v57 = vmul.f32 0.0078125, %v243_v55 }
 0x141   : > { %v256_v58 = vsub.f32 %v239_v45, %v252_v56  ;;  %v255_v59 = vsub.f32 %v238_v44, %v251_v57 }
 0x142   : > { %v247_v60 = vpop.xlane.xlu0 %246 }
 0x143   : > { %v253_v61 = vmul.f32 0.0078125, %v247_v60  ;;  %v260_v62 = vmul.f32 %v256_v58, %v256_v58  ;;  %v259_v63 = vmul.f32 %v255_v59, %v255_v59 }
 0x145   : > { %v257_v0 = vsub.f32 %v240_v51, %v253_v61  ;;  %265 = vadd.xlane.f32.xlu0 %v260_v62  ;;  %263 = vadd.xlane.f32.xlu1 %v259_v63 }
 0x146   : > { %v249_v1 = vpop.xlane.xlu0 %248 }
 0x147   : > { %v254_v2 = vmul.f32 0.0078125, %v249_v1  ;;  %v261_v3 = vmul.f32 %v257_v0, %v257_v0 }
 0x149   : > { %v258_v4 = vsub.f32 %v241_v53, %v254_v2  ;;  %267 = vadd.xlane.f32.xlu1 %v261_v3 }
 0x14b   : > { %v262_v5 = vmul.f32 %v258_v4, %v258_v4 }
 0x14d   : > { %269 = vadd.xlane.f32.xlu0 %v262_v5 }
 0x1d2   : > { %v264_v6 = vpop.xlane.xlu1 %263  ;;  %v266_v7 = vpop.xlane.xlu0 %265 }
 0x1d3   : > { %v271_v8 = vmul.f32 0.0078125, %v264_v6  ;;  %v272_v9 = vmul.f32 0.0078125, %v266_v7 }
 0x1d5   : > { %v275_v11 = vadd.f32 1e-05, %v271_v8  ;;  %v276_v12 = vadd.f32 1e-05, %v272_v9 }
 0x1d6   : > { %v268_v13 = vpop.xlane.xlu1 %267 }
 0x1d7   : > { %450 = vrsqrt.f32 %v275_v11  ;;  %v273_v15 = vmul.f32 0.0078125, %v268_v13 }
 0x1d8   : > { %452 = vrsqrt.f32 %v276_v12 }
 0x1d9   : > { %v277_v16 = vadd.f32 1e-05, %v273_v15 }
 0x1da   : > { %v270_v17 = vpop.xlane.xlu0 %269 }
 0x1db   : > { %454 = vrsqrt.f32 %v277_v16  ;;  %v274_v18 = vmul.f32 0.0078125, %v270_v17 }
 0x1dd   : > { %v278_v20 = vadd.f32 1e-05, %v274_v18 }
 0x1df   : > { %456 = vrsqrt.f32 %v278_v20 }
 0x1e1   : > { %v451_v23 = vpop.eup %450 }
 0x1e2   : > { %v453_v24 = vpop.eup %452  ;;  %v283_v26 = vmul.f32 %v451_v23, %v255_v59 }
 0x1e3   : > { %v284_v27 = vmul.f32 %v453_v24, %v256_v58 }
 0x1e4   : > { %v291_v28 = vmul.f32 %v290_v22, %v283_v26 }
 0x1e5   : > { %v455_v29 = vpop.eup %454  ;;  %v292_v30 = vmul.f32 %v290_v22, %v284_v27 }
 0x1e6   : > { %v299_v31 = vadd.f32 %v298_v25, %v291_v28  ;;  %v285_v32 = vmul.f32 %v455_v29, %v257_v0 }
 0x1e7   : > { %v300_v33 = vadd.f32 %v298_v25, %v292_v30 }
 0x1e8   : > { %v303_v10 = vmax.f32 %v299_v31, 0.0  ;;  %v293_v34 = vmul.f32 %v290_v22, %v285_v32 }
 0x1e9   : > { %v457_v35 = vpop.eup %456  ;;  %v304_v36 = vmax.f32 %v300_v33, 0.0 }
 0x1ea   : > { %307 = vst [vmem:[%s137_s30] sm:$0xff] %v303_v10  ;;  %v301_v37 = vadd.f32 %v298_v25, %v293_v34  ;;  %v286_v14 = vmul.f32 %v457_v35, %v258_v4 }
 0x1eb   : > { %308 = vst [vmem:[%s137_s30 + $0x8] sm:$0xff] %v304_v36 }
 0x1ec   : > { %v305_v38 = vmax.f32 %v301_v37, 0.0  ;;  %v294_v39 = vmul.f32 %v290_v22, %v286_v14 }
 0x1ee   : > { %309 = vst [vmem:[%s137_s30 + $0x10] sm:$0xff] %v305_v38  ;;  %v302_v40 = vadd.f32 %v298_v25, %v294_v39 }
 0x1f0   : > { %v306_v41 = vmax.f32 %v302_v40, 0.0 }
 0x1f2   : > { %310 = vst [vmem:[%s137_s30 + $0x18] sm:$0xff] %v306_v41 }
 0x1f3   : > { %471 = shalt.err (!%p468_p3)
}
 0x1f4   : > { %s472_s21 = scalar_lea.hbm %s621_s7, 512  ;;  %s476_s24 = scalar_lea.hbm %s670_s2, 2048 }
 0x1f5   : > { %p473_p4 = scmp.ne.s32.totalorder %s621_s7, %s472_s21  ;;  %p477_p9 = scmp.lt.u32.totalorder %s621_s7, %s670_s2 }
 0x1f6   : > { %p478_p10 = scmp.lt.u32.totalorder %s476_s24, %s472_s21  ;;  %p480_p12 = scmp.lt.u32.totalorder %s472_s21, %s621_s7 }
 0x1f7   : > { %p474_p7 = pnand %p473_p4, %p581_p5 }
 0x1f8   : > { %p479_p11 = por %p478_p10, %p477_p9 }
 0x1f9   : > { %p475_p8 = pneg %p474_p7 }
 0x1fa   : > { %p481_p13 = por %p480_p12, %p479_p11 }
 0x1fc   : > { %p482_p0 = pnand %p481_p13, %p475_p8 }
 0x1fe   : > { %485 = shalt.err (!%p482_p0)
}
 0x1ff   : > { %s526_s27 = smov 128   ;;  %s527_s28 = smov 8  }
 0x200   : > { %400 = dma.vmem_to_hbm [thread:$0]  (%p581_p5), %s623_s4, 512, %s621_s7, %s627_s8, %s526_s27, %s526_s27, %s527_s28  }
 0x201 PF: > { %p406_p1 = scmp.ge.s32.totalorder %s520_s12, 2  ;;  %s340_s29 = sand.u32 1, %s508_s9  }
 0x202   : > { %s341_s30 = scalar_lea.sflag [#allocation3], %s340_s29 }
 0x203   : > { %p403_p2 = pnand %p406_p1, %p585_p6 }
 0x205   : > { %503 = dma.done.wait (!%p403_p2), %s341_s30, 512  }
 0x206   : > { %505 = vsyncadd (!%p403_p2), %s341_s30, 4294966784  ;;  %p12_p3 = scmp.ge.s32.totalorder %s568_s15, 6   ;;  %s673_s9 = smov %s512_s10 }
 0x207   : > { %s674_s10 = smov %s516_s11  ;;  %s675_s11 = smov %s579_s18 }
 0x208   : > { %s676_s12 = smov %s568_s15  ;;  %14 = sbr.rel (!%p12_p3) target bundleno = 3 (0x3), region = 63 }
 0x20f   :  { %346 = vsyncpa [#allocation3], 1 }
 0x210   :  { %348 = vsyncpa [#allocation3 + $0x1], 1 }

</bundles_post_ra>
